<compile_context>
chip_gen: v7x
topology: tpu7x:2x2x1
jax: 0.10.0
libtpu: 0.0.40
codegen_flags: <defaults>
</compile_context>

<pallas_src>
import functools

import jax
import jax.numpy as jnp
from jax.experimental import pallas as pl
from jax.experimental.pallas import tpu as pltpu


def attn_kernel(h_ref, z_ref, wwz_ref, bwv_ref, hatt_ref, attn_ref, *, batch):
    # h_ref, z_ref : (S*B, D)  flattened s-major (row = s*B + b)
    # wwz_ref      : (2D, V)   rows [0:D] = Ww^T, rows [D:2D] = Wz^T
    # bwv_ref      : (2, V)    row 0 = bw + bz, row 1 = Wv
    # hatt_ref     : (S*B, D)
    # attn_ref     : (S*B, 1)
    sb, d = h_ref.shape

    hf = h_ref[...]
    zf = z_ref[...]
    ww = wwz_ref[0:d, :]                          # (D, V) static slices of the
    wz = wwz_ref[d:2 * d, :]                      # packed weight operand
    bwz = bwv_ref[0:1, :]                         # (1, V) = bw + bz
    wv = bwv_ref[1:2, :]                          # (1, V)

    # Fused double linear layer: one pair of MXU dots with M = S*B rows.
    sum_w = (jnp.dot(hf, ww, preferred_element_type=jnp.float32)
             + jnp.dot(zf, wz, preferred_element_type=jnp.float32)
             + bwz)                               # (S*B, V)
    t = jnp.tanh(sum_w)

    # v-projection to one logit per row: VPU mul + lane reduce (keeps the MXU
    # free and avoids a lane-width-1 matmul result).
    u = jnp.sum(t * wv, axis=1, keepdims=True)    # (S*B, 1)
    # NOTE: v's bias is omitted on purpose: softmax(u + c, axis=seq) ==
    # softmax(u, axis=seq) and u itself is never an output -> dead math.

    # Softmax over the sequence axis, independently per batch column.
    # Stabilize with the global max (>= every column max, so exp never blows up).
    m = jnp.max(u, axis=0, keepdims=True)         # (1, 1)
    e = jnp.exp(u - m)                            # (S*B, 1)

    # Same-batch-column mask: rows i, j share a column iff i % batch == j % batch.
    # Batch ids via float divide + int truncation (exact for these magnitudes).
    ri = jax.lax.broadcasted_iota(jnp.int32, (sb, sb), 0).astype(jnp.float32)
    ci = jax.lax.broadcasted_iota(jnp.int32, (sb, sb), 1).astype(jnp.float32)
    bf = jnp.float32(batch)
    rb = ri - (ri / bf).astype(jnp.int32).astype(jnp.float32) * bf   # i % batch
    cb = ci - (ci / bf).astype(jnp.int32).astype(jnp.float32) * bf   # j % batch
    same_col = jnp.where(rb == cb, jnp.float32(1.0), jnp.float32(0.0))  # (S*B, S*B)

    # One square MXU dot gives every row the exp-sum of its own column
    # (all result lanes are identical; keep lane 0).
    e_wide = jnp.broadcast_to(e, (sb, sb))
    denom = jnp.dot(same_col, e_wide,
                    preferred_element_type=jnp.float32)[:, 0:1]       # (S*B, 1)

    attn = e / denom                              # (S*B, 1)

    hatt_ref[...] = attn * hf                     # broadcast over the D lanes
    attn_ref[...] = attn


def self_attention_forward(hidden, z, params):
    """hidden, z: (S, B, D) float32, D = 2*hidden_dim (PyTorch layout)."""
    S, B, D = hidden.shape

    # Contiguous leading-dim collapses: free XLA reshapes, no transposes.
    h2 = hidden.reshape(S * B, D)
    z2 = z.reshape(S * B, D)

    hatt2, attn2 = pl.pallas_call(
        functools.partial(attn_kernel, batch=B),
        out_shape=(
            jax.ShapeDtypeStruct((S * B, D), jnp.float32),
            jax.ShapeDtypeStruct((S * B, 1), jnp.float32),
        ),
        in_specs=[
            pl.BlockSpec(memory_space=pltpu.MemorySpace.VMEM),  # hidden (flat)
            pl.BlockSpec(memory_space=pltpu.MemorySpace.VMEM),  # z (flat)
            pl.BlockSpec(memory_space=pltpu.MemorySpace.VMEM),  # packed Ww|Wz
            pl.BlockSpec(memory_space=pltpu.MemorySpace.VMEM),  # packed bias|Wv
        ],
        out_specs=(
            pl.BlockSpec(memory_space=pltpu.MemorySpace.VMEM),
            pl.BlockSpec(memory_space=pltpu.MemorySpace.VMEM),
        ),
    )(h2, z2, params["wwz"], params["bwv"])

    h_att = hatt2.reshape(S, B, D)                # (S, B, D)
    attention = attn2.reshape(S, B)               # == attention.squeeze()
    return h_att, attention


def init_params(key, hidden_dim, v_dim):
    """Deterministic synthetic params mirroring nn.Linear shapes (packed)."""
    d = 2 * hidden_dim
    k = jax.random.split(key, 5)
    bound_d = 1.0 / float(d) ** 0.5
    bound_v = 1.0 / float(v_dim) ** 0.5
    ww = jax.random.uniform(k[0], (d, v_dim), jnp.float32, -bound_d, bound_d)
    wz = jax.random.uniform(k[1], (d, v_dim), jnp.float32, -bound_d, bound_d)
    bw = jax.random.uniform(k[2], (v_dim,), jnp.float32, -bound_d, bound_d)
    bz = jax.random.uniform(k[3], (v_dim,), jnp.float32, -bound_d, bound_d)
    wv = jax.random.uniform(k[4], (v_dim,), jnp.float32, -bound_v, bound_v)
    # v's bias is omitted: it cannot affect either output (softmax shift
    # invariance over the sequence axis; u is never returned).
    wwz = jnp.concatenate([ww, wz], axis=0)       # (2d, v_dim)
    bwv = jnp.stack([bw + bz, wv], axis=0)        # (2, v_dim)
    return {"wwz": wwz, "bwv": bwv}


def reference_forward(hidden, z, params):
    """Pure-JAX reference replicating the PyTorch forward's outputs."""
    D = hidden.shape[-1]
    ww = params["wwz"][:D]
    wz = params["wwz"][D:]
    bwz = params["bwv"][0]
    wv = params["bwv"][1]
    sum_w = hidden @ ww + z @ wz + bwz
    u = jnp.tanh(sum_w) @ wv[:, None]             # (S, B, 1)
    attention = jax.nn.softmax(u, axis=0)
    h_att = attention * hidden
    return h_att, attention[..., 0]


if __name__ == "__main__":
    hidden_dim = 16
    v_dim = 16
    S, B = 8, 2
    D = 2 * hidden_dim

    key = jax.random.PRNGKey(0)
    k_h, k_z, k_p = jax.random.split(key, 3)
    hidden = jax.random.normal(k_h, (S, B, D), jnp.float32)
    z = jax.random.normal(k_z, (S, B, D), jnp.float32)
    params = init_params(k_p, hidden_dim, v_dim)

    h_att, attention = self_attention_forward(hidden, z, params)
    h_att = jax.block_until_ready(h_att)
    attention = jax.block_until_ready(attention)

    h_ref, a_ref = reference_forward(hidden, z, params)
    assert h_att.shape == (S, B, D) and attention.shape == (S, B)
    assert jnp.allclose(h_att, h_ref, atol=1e-5, rtol=1e-5)
    assert jnp.allclose(attention, a_ref, atol=1e-5, rtol=1e-5)

    print("KERNEL_OK")
</pallas_src>

<mosaic_0001>
module attributes {stable_mosaic.version = 11 : i64} {
  func.func @attn_kernel(%arg0: memref<16x32xf32, #tpu.memory_space<vmem>>, %arg1: memref<16x32xf32, #tpu.memory_space<vmem>>, %arg2: memref<64x16xf32, #tpu.memory_space<vmem>>, %arg3: memref<2x16xf32, #tpu.memory_space<vmem>>, %arg4: memref<16x32xf32, #tpu.memory_space<vmem>>, %arg5: memref<16x1xf32, #tpu.memory_space<vmem>>) attributes {dimension_semantics = [], scalar_prefetch = 0 : i64, scratch_operands = 0 : i64, tpu.core_type = #tpu.core_type<tc>} {
    %c0 = arith.constant 0 : index
    %c0_0 = arith.constant 0 : index
    %0 = vector.load %arg0[%c0, %c0_0] : memref<16x32xf32, #tpu.memory_space<vmem>>, vector<16x32xf32>
    %c0_1 = arith.constant 0 : index
    %c0_2 = arith.constant 0 : index
    %1 = vector.load %arg1[%c0_1, %c0_2] : memref<16x32xf32, #tpu.memory_space<vmem>>, vector<16x32xf32>
    %c0_3 = arith.constant 0 : index
    %c0_4 = arith.constant 0 : index
    %2 = vector.load %arg2[%c0_3, %c0_4] : memref<64x16xf32, #tpu.memory_space<vmem>>, vector<32x16xf32>
    %c32 = arith.constant 32 : index
    %c0_5 = arith.constant 0 : index
    %3 = vector.load %arg2[%c32, %c0_5] : memref<64x16xf32, #tpu.memory_space<vmem>>, vector<32x16xf32>
    %c0_6 = arith.constant 0 : index
    %c0_7 = arith.constant 0 : index
    %4 = vector.load %arg3[%c0_6, %c0_7] : memref<2x16xf32, #tpu.memory_space<vmem>>, vector<1x16xf32>
    %c1 = arith.constant 1 : index
    %c0_8 = arith.constant 0 : index
    %5 = vector.load %arg3[%c1, %c0_8] : memref<2x16xf32, #tpu.memory_space<vmem>>, vector<1x16xf32>
    %cst = arith.constant dense<0.000000e+00> : vector<16x16xf32>
    %6 = tpu.matmul %0, %2, %cst {dimension_numbers = #tpu.dot_dimension_numbers<[1], [0], [0], [1], [0, 0, 1, 1], [], []>} : vector<16x32xf32>, vector<32x16xf32>, vector<16x16xf32> -> vector<16x16xf32>
    %cst_9 = arith.constant dense<0.000000e+00> : vector<16x16xf32>
    %7 = tpu.matmul %1, %3, %cst_9 {dimension_numbers = #tpu.dot_dimension_numbers<[1], [0], [0], [1], [0, 0, 1, 1], [], []>} : vector<16x32xf32>, vector<32x16xf32>, vector<16x16xf32> -> vector<16x16xf32>
    %8 = arith.addf %6, %7 : vector<16x16xf32>
    %9 = vector.broadcast %4 : vector<1x16xf32> to vector<16x16xf32>
    %10 = arith.addf %8, %9 : vector<16x16xf32>
    %11 = math.tanh %10 : vector<16x16xf32>
    %12 = vector.broadcast %5 : vector<1x16xf32> to vector<16x16xf32>
    %13 = arith.mulf %11, %12 : vector<16x16xf32>
    %cst_10 = arith.constant dense<0.000000e+00> : vector<16xf32>
    %14 = vector.multi_reduction <add>, %13, %cst_10 [1] : vector<16x16xf32> to vector<16xf32>
    %15 = vector.shape_cast %14 : vector<16xf32> to vector<16x1xf32>
    %cst_11 = arith.constant dense<0xFF800000> : vector<1xf32>
    %16 = vector.multi_reduction <maximumf>, %15, %cst_11 [0] : vector<16x1xf32> to vector<1xf32>
    %17 = vector.shape_cast %16 : vector<1xf32> to vector<1x1xf32>
    %18 = vector.broadcast %17 : vector<1x1xf32> to vector<16x1xf32>
    %19 = arith.subf %15, %18 : vector<16x1xf32>
    %20 = math.exp %19 : vector<16x1xf32>
    %21 = tpu.iota {dimensions = array<i32: 0>} : vector<16x16xi32>
    %22 = arith.sitofp %21 : vector<16x16xi32> to vector<16x16xf32>
    %23 = tpu.iota {dimensions = array<i32: 1>} : vector<16x16xi32>
    %24 = arith.sitofp %23 : vector<16x16xi32> to vector<16x16xf32>
    %cst_12 = arith.constant 2.000000e+00 : f32
    %25 = vector.broadcast %cst_12 : f32 to vector<16x16xf32>
    %26 = arith.divf %22, %25 : vector<16x16xf32>
    %27 = arith.fptosi %26 : vector<16x16xf32> to vector<16x16xi32>
    %28 = arith.sitofp %27 : vector<16x16xi32> to vector<16x16xf32>
    %cst_13 = arith.constant 2.000000e+00 : f32
    %29 = vector.broadcast %cst_13 : f32 to vector<16x16xf32>
    %30 = arith.mulf %28, %29 : vector<16x16xf32>
    %31 = arith.subf %22, %30 : vector<16x16xf32>
    %cst_14 = arith.constant 2.000000e+00 : f32
    %32 = vector.broadcast %cst_14 : f32 to vector<16x16xf32>
    %33 = arith.divf %24, %32 : vector<16x16xf32>
    %34 = arith.fptosi %33 : vector<16x16xf32> to vector<16x16xi32>
    %35 = arith.sitofp %34 : vector<16x16xi32> to vector<16x16xf32>
    %cst_15 = arith.constant 2.000000e+00 : f32
    %36 = vector.broadcast %cst_15 : f32 to vector<16x16xf32>
    %37 = arith.mulf %35, %36 : vector<16x16xf32>
    %38 = arith.subf %24, %37 : vector<16x16xf32>
    %39 = arith.cmpf oeq, %31, %38 : vector<16x16xf32>
    %cst_16 = arith.constant 1.000000e+00 : f32
    %cst_17 = arith.constant 0.000000e+00 : f32
    %40 = vector.broadcast %cst_16 : f32 to vector<16x16xf32>
    %41 = vector.broadcast %cst_17 : f32 to vector<16x16xf32>
    %42 = arith.select %39, %40, %41 : vector<16x16xi1>, vector<16x16xf32>
    %43 = vector.shape_cast %20 : vector<16x1xf32> to vector<16x1xf32>
    %44 = vector.broadcast %43 : vector<16x1xf32> to vector<16x16xf32>
    %cst_18 = arith.constant dense<0.000000e+00> : vector<16x16xf32>
    %45 = tpu.matmul %42, %44, %cst_18 {dimension_numbers = #tpu.dot_dimension_numbers<[1], [0], [0], [1], [0, 0, 1, 1], [], []>} : vector<16x16xf32>, vector<16x16xf32>, vector<16x16xf32> -> vector<16x16xf32>
    %46 = vector.extract_strided_slice %45 {offsets = [0, 0], sizes = [16, 1], strides = [1, 1]} : vector<16x16xf32> to vector<16x1xf32>
    %47 = arith.divf %20, %46 : vector<16x1xf32>
    %48 = vector.broadcast %47 : vector<16x1xf32> to vector<16x32xf32>
    %49 = arith.mulf %48, %0 : vector<16x32xf32>
    %c0_19 = arith.constant 0 : index
    %c0_20 = arith.constant 0 : index
    %50 = vector.load %arg4[%c0_19, %c0_20] : memref<16x32xf32, #tpu.memory_space<vmem>>, vector<16x32xf32>
    tpu.vector_store %arg4[%c0_19, %c0_20], %49 {strides = array<i32>} : memref<16x32xf32, #tpu.memory_space<vmem>>, vector<16x32xf32>,
    %c0_21 = arith.constant 0 : index
    %c0_22 = arith.constant 0 : index
    %51 = vector.load %arg5[%c0_21, %c0_22] : memref<16x1xf32, #tpu.memory_space<vmem>>, vector<16x1xf32>
    tpu.vector_store %arg5[%c0_21, %c0_22], %47 {strides = array<i32>} : memref<16x1xf32, #tpu.memory_space<vmem>>, vector<16x1xf32>,
    return
  }
}

</mosaic_0001>

<bundles_post_ra>
// kernel: tpu_custom_call.1
= control target key start
LH: loop header
LB: loop body
LE: loop exit
PB: predicated region body
PF: predicated region fallthrough
CT: control target
= control target key end

     0   :  { %vm34_vm0 = vcmask 261120   ;;  %s618_s0 = inlined_call_operand.vmem [shape: f32[16,32], index: 0, kind: input, shape index: {}]   ;;  %s619_s1 = inlined_call_operand.vmem [shape: f32[16,32], index: 1, kind: input, shape index: {}]   ;;  %s620_s2 = inlined_call_operand.vmem [shape: f32[64,16], index: 2, kind: input, shape index: {}]   ;;  %s621_s3 = inlined_call_operand.vmem [shape: f32[2,16], index: 3, kind: input, shape index: {}]   ;;  %s622_s4 = inlined_call_operand.hbm [shape: f32[16,32], index: 4, kind: output, shape index: {0}]   ;;  %s623_s5 = inlined_call_operand.vmem [shape: f32[16,1], index: 5, kind: output, shape index: {1}]  }
   0x1   :  { %v28_v0 = vld [vmem:[%s620_s2 + $0x20] sm:$0xff]  ;;  %v29_v1 = vld [vmem:[%s620_s2 + $0x28] sm:$0xff]  ;;  %v30_v5 = vld [vmem:[%s620_s2 + $0x30] sm:$0xff] }
   0x2   :  { %v24_v2 = vld [vmem:[%s620_s2] sm:$0xff]  ;;  %v434_v3 = vpack.c.bf16 %v29_v1, %v28_v0  ;;  %v25_v4 = vld [vmem:[%s620_s2 + $0x8] sm:$0xff]  ;;  %v31_v6 = vld [vmem:[%s620_s2 + $0x38] sm:$0xff] }
   0x3   :  { %v442_v7 = vpack.c.bf16 %v25_v4, %v24_v2  ;;  %v438_v8 = vpack.c.bf16 %v31_v6, %v30_v5  ;;  %v26_v9 = vld [vmem:[%s620_s2 + $0x10] sm:$0xff]  ;;  %v27_v10 = vld [vmem:[%s620_s2 + $0x18] sm:$0xff]  ;;  %v22_v11 = vld [vmem:[%s619_s1] sm:$0xff] }
   0x4   :  { %435 = vmatprep.subr.bf16.mxu1 %v434_v3  ;;  %v446_v12 = vpack.c.bf16 %v27_v10, %v26_v9  ;;  %413 = vmatprep.mubr.msk.f32.mxu1 %vm34_vm0, %v22_v11  ;;  %v571_v13 = vld [vmem:[%s618_s0] sm:$0xff] }
   0x5   :  { %443 = vmatprep.subr.bf16.mxu0 %v442_v7  ;;  %437 = vmatpush3.bf16.msra.mxu1 %v434_v3 }
   0x6   :  { %11 = vsyncpa [#allocation3], 0  ;;  %445 = vmatpush3.bf16.msra.mxu0 %v442_v7  ;;  %439 = vmatprep.subr.bf16.mxu1 %v438_v8  ;;  %v23_v14 = vld [vmem:[%s619_s1 + $0x8] sm:$0xff]  ;;  %v385_v17 = vld [vmem:[%s621_s3] ss:$0 sm:$0xff]  ;;  %vm211_vm1 = vcmask 130048   ;;  %v231_v32 = vlaneseq }
   0x7   :  { %447 = vmatprep.subr.bf16.mxu0 %v446_v12  ;;  %424 = vmatprep.mubr.msk.f32.mxu0 %vm34_vm0, %v571_v13  ;;  %v581_v15 = vld [vmem:[%s618_s0 + $0x8] sm:$0xff]  ;;  %v386_v25 = vld [vmem:[%s621_s3 + $0x1] ss:$0 sm:$0xff]  ;;  %v505_v57 = vmov 0.0   ;;  %vm358_vm4 = vcmask 7168   ;;  %s507_s21 = smov [#allocation2]  }
   0x8   :  { %v232_v33 = vshrl.u32 %v231_v32, 7  ;;  %v237_v34 = vand.u32 127, %v231_v32  ;;  %s366_s22 = sshll.u32 %s507_s21, 4  ;;  %s367_s22 = int_to_ptr.vmem [resolvable:$true] %s366_s22 }
   0x9   :  { %441 = vmatpush3.bf16.msra.mxu1 %v438_v8  ;;  %s481_s23 = scalar_lea.vmem %s367_s22, 256  ;;  %p486_p1 = scmp.lt.s32.totalorder %s367_s22, %s367_s22 }
   0xa   :  { %449 = vmatpush3.bf16.msra.mxu0 %v446_v12  ;;  %v233_v35 = vadd.s32 8, %v232_v33  ;;  %v234_v36 = vcvt.s32.f32 %v232_v33  ;;  %v238_v37 = vcvt.s32.f32 %v237_v34  ;;  %v506_v12 = vmov 0   ;;  %p482_p0 = scmp.ne.s32.totalorder %s367_s22, %s481_s23  ;;  %p487_p2 = scmp.lt.s32.totalorder %s481_s23, %s481_s23 }
   0xb   :  { %467 = vset.pattern.permute.xlu1 %v506_v12  ;;  %468 = vset.pattern.permute.xlu0 %v506_v12 }
   0xc   :  { %414 = vmatmul.mubr.msk.f32.vlgmr.msra.gmra.mrb[0].mxu1 %vm34_vm0, %v23_v14  ;;  %v235_v38 = vcvt.s32.f32 %v233_v35  ;;  %v240_v39 = vmul.f32 0.5, %v234_v36  ;;  %v250_v40 = vmul.f32 0.5, %v238_v37  ;;  %p488_p3 = por %p487_p2, %p486_p1 }
   0xd   :  { %425 = vmatmul.mubr.msk.f32.vlgmr.msra.gmra.mrb[0].mxu0 %vm34_vm0, %v581_v15 }
   0xe   :  { %v241_v41 = vmul.f32 0.5, %v235_v38  ;;  %v456_v42 = vtrunc.f32 %v240_v39  ;;  %v460_v43 = vtrunc.f32 %v250_v40  ;;  %p489_p4 = pnand %p488_p3, %p482_p0 }
  0x10   :  { %v458_v44 = vtrunc.f32 %v241_v41  ;;  %v457_v45 = vcvt.f32.s32 %v456_v42  ;;  %v461_v46 = vcvt.f32.s32 %v460_v43 }
  0x12   :  { %v459_v47 = vcvt.f32.s32 %v458_v44  ;;  %v244_v48 = vcvt.s32.f32 %v457_v45  ;;  %v252_v49 = vcvt.s32.f32 %v461_v46 }
  0x14   :  { %v245_v50 = vcvt.s32.f32 %v459_v47  ;;  %v246_v51 = vmul.f32 2.0, %v244_v48  ;;  %v253_v52 = vmul.f32 2.0, %v252_v49 }
  0x16   :  { %v247_v53 = vmul.f32 2.0, %v245_v50  ;;  %v248_v54 = vsub.f32 %v234_v36, %v246_v51  ;;  %v254_v55 = vsub.f32 %v238_v37, %v253_v52 }
  0x18   :  { %v249_v56 = vsub.f32 %v235_v38, %v247_v53  ;;  %vm255_vm2 = vcmp.eq.f32.partialorder %v248_v54, %v254_v55 }
  0x19   :  { %v257_v58 = vsel %vm255_vm2, 1.0, %v505_v57 }
  0x1a   :  { %vm256_vm3 = vcmp.eq.f32.partialorder %v249_v56, %v254_v55  ;;  %431 = vmatprep.mubr.msk.f32.mxu1 %vm211_vm1, %v257_v58 }
  0x1b   :  { %v258_v59 = vsel %vm256_vm3, 1.0, %v505_v57 }
  0xdf   :  { %v415_v16 = vpop.f32.mrb[0].mxu1 }
  0xe0   :  { %v426_v18 = vpop.f32.mrb[0].mxu0  ;;  %v107_v19 = vpop.f32.mrb[1].mxu1 }
  0xe1   :  { %v194_v20 = vadd.f32 %v426_v18, %v415_v16  ;;  %v188_v21 = vpop.f32.mrb[1].mxu0 }
  0xe2   :  { %v189_v22 = vadd.f32 %v188_v21, %v107_v19 }
  0xe3   :  { %v202_v23 = vadd.f32 %v385_v17, %v194_v20 }
  0xe4   :  { %v201_v24 = vadd.f32 %v385_v17, %v189_v22 }
  0xe5   :  { %469 = vtanh.f32 %v202_v23 }
  0xe6   :  { %471 = vtanh.f32 %v201_v24 }
  0xef   :  { %v470_v26 = vpop.eup %469 }
  0xf0   :  { %v472_v27 = vpop.eup %471  ;;  %v210_v30 = vmul.f32 %v470_v26, %v386_v25 }
  0xf1   :  { %v209_v28 = vmul.f32 %v472_v27, %v386_v25 }
  0xf2   :  { %v215_v31 = vsel %vm211_vm1, %v210_v30, 0.0 }
  0xf3   :  { %v212_v29 = vsel %vm211_vm1, %v209_v28, 0.0 }
  0xf4   :  { %213 = vadd.xlane.f32.xlu0 %v212_v29 }
  0xf8   :  { %216 = vadd.xlane.f32.xlu0 %v215_v31 }
 0x181   :  { %v214_v60 = vpop.xlane.xlu0 %213 }
 0x185   :  { %v217_v61 = vpop.xlane.xlu0 %216 }
 0x186   :  { %v218_v62 = vmax.f32 %v214_v60, %v217_v61 }
 0x188   :  { %v219_v63 = vrot.slane %v218_v62, 4 }
 0x18a   :  { %v220_v0 = vmax.f32 %v218_v62, %v219_v63 }
 0x18c   :  { %v221_v1 = vrot.slane %v220_v0, 2 }
 0x18e   :  { %v222_v2 = vmax.f32 %v220_v0, %v221_v1 }
 0x190   :  { %v223_v3 = vrot.slane %v222_v2, 1 }
 0x192   :  { %v224_v4 = vmax.f32 %v222_v2, %v223_v3 }
 0x194   :  { %v225_v5 = vsub.f32 %v214_v60, %v224_v4  ;;  %v226_v6 = vsub.f32 %v217_v61, %v224_v4 }
 0x196   :  { %v227_v7 = vmul.f32 1.442695, %v225_v5  ;;  %v229_v8 = vmul.f32 1.442695, %v226_v6 }
 0x198   :  { %473 = vpow2.f32 %v227_v7 }
 0x199   :  { %475 = vpow2.f32 %v229_v8 }
 0x1a2   :  { %v474_v9 = vpop.eup %473 }
 0x1a3   :  { %v476_v10 = vpop.eup %475 }
 0x1a4   :  { %v450_v11 = vpack.c.bf16 %v476_v10, %v474_v9 }
 0x1a6   :  { %451 = vmatprep.subr.bf16.mxu1 %v450_v11 }
 0x1a7   :  { %453 = vmatpush3.bf16.msra.mxu1 %v450_v11 }
 0x1aa   :  { %432 = vmatmul.mubr.msk.f32.vlgmr.msra.gmra.mrb[2].mxu1 %vm211_vm1, %v258_v59 }
 0x27d   :  { %v433_v14 = vpop.f32.mrb[2].mxu1 }
 0x27e   :  { %477 = vrcp.f32 %v433_v14  ;;  %v331_v16 = vpop.f32.mrb[3].mxu1 }
 0x27f   :  { %479 = vrcp.f32 %v331_v16 }
 0x288   :  { %v478_v17 = vpop.eup %477 }
 0x289   :  { %v480_v18 = vpop.eup %479  ;;  %v343_v19 = vmul.f32 %v478_v17, %v476_v10 }
 0x28a   :  { %v341_v20 = vmul.f32 %v480_v18, %v474_v9 }
 0x28b   :  { %360 = vst.msk [vmem:[%s623_s5 + $0x8] sm:$0xff] %vm358_vm4, %v343_v19 }
 0x28c   :  { %346 = vperm.xlu1 %467, %v341_v20   ;;  %359 = vst.msk [vmem:[%s623_s5] sm:$0xff] %vm358_vm4, %v341_v20 }
 0x290   :  { %351 = vperm.xlu1 %467, %v343_v19  }
 0x30b   :  { %v347_v21 = vpop.permute.xlu1 %346 }
 0x30c   :  { %v354_v22 = vmul.f32 %v347_v21, %v571_v13 }
 0x30e   :  { %356 = vst.msk [vmem:[#allocation2] sm:$0xff] %vm34_vm0, %v354_v22 }
 0x30f   :  { %v352_v23 = vpop.permute.xlu1 %351 }
 0x310   :  { %v355_v24 = vmul.f32 %v352_v23, %v581_v15 }
 0x312   :  { %357 = vst.msk [vmem:[#allocation2 + $0x8] sm:$0xff] %vm34_vm0, %v355_v24 }
 0x313   :  { %492 = shalt.err (!%p489_p4)
}
 0x314   :  { %s493_s25 = scalar_lea.hbm %s622_s4, 256 }
 0x315   :  { %p494_p5 = scmp.ne.s32.totalorder %s622_s4, %s493_s25  ;;  %p497_p6 = scmp.lt.u32.totalorder %s493_s25, %s622_s4 }
 0x317   :  { %p499_p7 = pnand %p497_p6, %p494_p5 }
 0x319   :  { %502 = shalt.err (!%p499_p7)
}
 0x31a   :  { %s508_s30 = smov 128   ;;  %s509_s6 = smov 8  }
 0x31b   :  { %372 = dma.vmem_to_hbm [thread:$0]  %s367_s22, 256, %s622_s4, [#allocation3], %s508_s30, %s508_s30, %s509_s6  }
 0x31c   :  { %503 = dma.done.wait [#allocation3], 256  }
 0x31d   :  { %504 = vsyncadd [#allocation3], 4294967040 }
 0x31e   :  { %380 = vsyncpa [#allocation3], 1 }

</bundles_post_ra>
